<compile_context>
chip_gen: v7x
topology: tpu7x:2x2x1
jax: 0.10.0
libtpu: 0.0.40
codegen_flags: <defaults>
</compile_context>

<pallas_src>
from functools import partial

import numpy as np
import jax
import jax.numpy as jnp
from jax import lax
from jax.experimental import pallas as pl
from jax.experimental.pallas import tpu as pltpu


# ----------------------------------------------------------------------------
# Bilinear interpolation matrix (PyTorch nn.Upsample, align_corners=False)
# ----------------------------------------------------------------------------
def bilinear_matrix(in_size: int, out_size: int) -> np.ndarray:
    """A @ x interpolates a length-`in_size` signal to length `out_size`.

    Note: uses scale = in/out; identical to PyTorch's 1/scale_factor indexing
    whenever floor(in * scale_factor) == in * scale_factor (true for the
    integer scale factors a dsv head uses).  Every row sums to 1, which is
    what makes the bias fold-through exact.
    """
    scale = in_size / out_size
    i = np.arange(out_size, dtype=np.float64)
    src = (i + 0.5) * scale - 0.5
    src = np.maximum(src, 0.0)                      # PyTorch clamps negatives to 0
    i0 = np.minimum(np.floor(src).astype(np.int64), in_size - 1)
    i1 = np.minimum(i0 + 1, in_size - 1)
    lam = src - i0
    A = np.zeros((out_size, in_size), dtype=np.float32)
    np.add.at(A, (np.arange(out_size), i0), (1.0 - lam).astype(np.float32))
    np.add.at(A, (np.arange(out_size), i1), lam.astype(np.float32))
    return A


# ----------------------------------------------------------------------------
# Pallas kernel: fused (1x1 conv + separable bilinear upsample), whole batch
# ----------------------------------------------------------------------------
def dsv_kernel(x_ref, wb_ref, awt_ref, ah_ref, o_ref):
    # x_ref  : (H, K_aug, W)      K_aug = C_in*N + 1, last row per h is ones
    # wb_ref : (M, K_aug)         rows (c_out, n): [kron(weight, I_N) | bias]
    # awt_ref: (W, W_out)         A_w^T
    # ah_ref : (H_out, H)         A_h
    # o_ref  : (H_out, M*W_out)   lane-dense output slab (rows h_out, lanes (m, w_out))
    H, K_aug, W = x_ref.shape
    M = wb_ref.shape[0]
    W_out = awt_ref.shape[1]

    # Tiny operators broadcast along the H batch dim (hoisted, single use).
    wb_b = jnp.broadcast_to(wb_ref[...][None], (H, M, K_aug))
    awt_b = jnp.broadcast_to(awt_ref[...][None], (H, W, W_out))

    # 1) 1x1 conv (+ bias via ones row) for every (batch, out-channel) pair:
    #    H-batched MXU matmul, (H, M, K_aug) @ (H, K_aug, W) -> (H, M, W).
    y = lax.dot_general(wb_b, x_ref[...],
                        dimension_numbers=(((2,), (1,)), ((0,), (0,))),
                        preferred_element_type=jnp.float32)

    # 2) Bilinear along W: H-batched matmul against the tiny A_w^T,
    #    (H, M, W) @ (H, W, W_out) -> (H, M, W_out).
    z = lax.dot_general(y, awt_b,
                        dimension_numbers=(((2,), (1,)), ((0,), (0,))),
                        preferred_element_type=jnp.float32)

    # 3) In-VMEM relayout of the tiny intermediate (H x M*W_out = 8 KiB), then
    #    bilinear along H as one 2-D matmul; the result is the output slab.
    z2 = z.reshape(H, M * W_out)
    o_ref[...] = jnp.dot(ah_ref[...], z2,
                         preferred_element_type=jnp.float32).astype(o_ref.dtype)


# ----------------------------------------------------------------------------
# Wrapper (jitted; constants built once at trace time)
# ----------------------------------------------------------------------------
@partial(jax.jit, static_argnames=("scale_factor",))
def unet_dsv2(x, weight, bias, scale_factor):
    """x: (N, C_in, H, W) f32; weight: (C_out, C_in); bias: (C_out,)."""
    N, C_in, H, W = x.shape
    C_out = weight.shape[0]
    H_out = int(np.floor(H * scale_factor))
    W_out = int(np.floor(W * scale_factor))
    M = C_out * N
    K_aug = C_in * N + 1

    # Tiny separable bilinear operators.
    ah = jnp.asarray(bilinear_matrix(H, H_out))          # (H_out, H)
    awt = jnp.asarray(bilinear_matrix(W, W_out).T)       # (W, W_out)

    # Batched 1x1-conv operator with bias folded in as the last column.
    wbk = jnp.kron(weight, jnp.eye(N, dtype=weight.dtype))              # (M, C_in*N)
    wb = jnp.concatenate([wbk, jnp.repeat(bias, N)[:, None]], axis=1)   # (M, K_aug)
    wb = wb.astype(x.dtype)

    # Input slab (pure layout plumbing): rows-of-batch h, per-h matrix
    # (C_in*N + 1, W) with a trailing ones row feeding the bias column.
    xt = jnp.transpose(x, (2, 1, 0, 3)).reshape(H, C_in * N, W)
    x_aug = jnp.concatenate([xt, jnp.ones((H, 1, W), x.dtype)], axis=1)

    slab = pl.pallas_call(
        dsv_kernel,
        out_shape=jax.ShapeDtypeStruct((H_out, M * W_out), x.dtype),
        grid_spec=pltpu.PrefetchScalarGridSpec(
            num_scalar_prefetch=0,
            grid=(1,),                                    # whole problem in one step
            in_specs=[
                pl.BlockSpec((H, K_aug, W), lambda i: (0, 0, 0)),
                pl.BlockSpec((M, K_aug), lambda i: (0, 0)),
                pl.BlockSpec((W, W_out), lambda i: (0, 0)),
                pl.BlockSpec((H_out, H), lambda i: (0, 0)),
            ],
            out_specs=pl.BlockSpec((H_out, M * W_out), lambda i: (0, 0)),
        ),
        compiler_params=pltpu.CompilerParams(
            dimension_semantics=("arbitrary",),
        ),
    )(x_aug, wb, awt, ah)

    # Layout plumbing back to PyTorch's NCHW (outside the kernel).
    return jnp.transpose(slab.reshape(H_out, C_out, N, W_out), (2, 1, 0, 3))


# ----------------------------------------------------------------------------
# Pure-JAX reference (same math as the PyTorch module) for a sanity check
# ----------------------------------------------------------------------------
def unet_dsv2_ref(x, weight, bias, scale_factor):
    N, C_in, H, W = x.shape
    H_out = int(np.floor(H * scale_factor))
    W_out = int(np.floor(W * scale_factor))
    ah = jnp.asarray(bilinear_matrix(H, H_out))
    aw = jnp.asarray(bilinear_matrix(W, W_out))
    conv = jnp.einsum('oc,nchw->nohw', weight, x) + bias[None, :, None, None]
    up_h = jnp.einsum('ph,nohw->nopw', ah, conv)
    return jnp.einsum('qw,nopw->nopq', aw, up_h)


if __name__ == "__main__":
    # Module config: UnetDsv2(in_size=4, out_size=2, scale_factor=2)
    in_size, out_size, scale_factor = 4, 2, 2
    N, H, W = 2, 16, 16

    key = jax.random.PRNGKey(0)
    kx, kw, kb = jax.random.split(key, 3)

    x = jax.random.normal(kx, (N, in_size, H, W), dtype=jnp.float32)
    # Deterministic synthetic parameters (Conv2d kernel_size=1 -> (C_out, C_in)).
    fan_in = float(in_size)  # kernel_size=1
    bound = 1.0 / np.sqrt(fan_in)
    weight = jax.random.uniform(kw, (out_size, in_size), jnp.float32, -bound, bound)
    bias = jax.random.uniform(kb, (out_size,), jnp.float32, -bound, bound)

    out = unet_dsv2(x, weight, bias, scale_factor=scale_factor)
    out = jax.block_until_ready(out)

    ref = jax.block_until_ready(unet_dsv2_ref(x, weight, bias, scale_factor))
    assert out.shape == (N, out_size, H * scale_factor, W * scale_factor)
    np.testing.assert_allclose(np.asarray(out), np.asarray(ref), rtol=1e-5, atol=1e-5)

    print("KERNEL_OK")
</pallas_src>

<mosaic_0001>
module attributes {stable_mosaic.version = 11 : i64} {
  func.func @dsv_kernel(%arg0: i32, %arg1: memref<16x9x16xf32, #tpu.memory_space<vmem>>, %arg2: memref<4x9xf32, #tpu.memory_space<vmem>>, %arg3: memref<16x32xf32, #tpu.memory_space<vmem>>, %arg4: memref<32x16xf32, #tpu.memory_space<vmem>>, %arg5: memref<32x128xf32, #tpu.memory_space<vmem>>) attributes {dimension_semantics = [#tpu.dimension_semantics<arbitrary>], iteration_bounds = array<i64: 1>, scalar_prefetch = 0 : i64, scratch_operands = 0 : i64, tpu.core_type = #tpu.core_type<tc>, window_params = [{pipeline_mode = #tpu.pipeline_mode<synchronous>, transform_indices = @transform_0, window_bounds = array<i64: 16, 9, 16>}, {pipeline_mode = #tpu.pipeline_mode<synchronous>, transform_indices = @transform_1, window_bounds = array<i64: 4, 9>}, {pipeline_mode = #tpu.pipeline_mode<synchronous>, transform_indices = @transform_2, window_bounds = array<i64: 16, 32>}, {pipeline_mode = #tpu.pipeline_mode<synchronous>, transform_indices = @transform_3, window_bounds = array<i64: 32, 16>}, {pipeline_mode = #tpu.pipeline_mode<synchronous>, transform_indices = @transform_4, window_bounds = array<i64: 32, 128>}]} {
    %c0 = arith.constant 0 : index
    %c0_0 = arith.constant 0 : index
    %0 = vector.load %arg2[%c0, %c0_0] : memref<4x9xf32, #tpu.memory_space<vmem>>, vector<4x9xf32>
    %1 = vector.shape_cast %0 : vector<4x9xf32> to vector<1x4x9xf32>
    %2 = vector.shape_cast %1 : vector<1x4x9xf32> to vector<1x4x9xf32>
    %3 = vector.broadcast %2 : vector<1x4x9xf32> to vector<16x4x9xf32>
    %c0_1 = arith.constant 0 : index
    %c0_2 = arith.constant 0 : index
    %4 = vector.load %arg3[%c0_1, %c0_2] : memref<16x32xf32, #tpu.memory_space<vmem>>, vector<16x32xf32>
    %5 = vector.shape_cast %4 : vector<16x32xf32> to vector<1x16x32xf32>
    %6 = vector.shape_cast %5 : vector<1x16x32xf32> to vector<1x16x32xf32>
    %7 = vector.broadcast %6 : vector<1x16x32xf32> to vector<16x16x32xf32>
    %c0_3 = arith.constant 0 : index
    %c0_4 = arith.constant 0 : index
    %c0_5 = arith.constant 0 : index
    %8 = vector.load %arg1[%c0_3, %c0_4, %c0_5] : memref<16x9x16xf32, #tpu.memory_space<vmem>>, vector<16x9x16xf32>
    %cst = arith.constant dense<0.000000e+00> : vector<16x4x16xf32>
    %9 = tpu.matmul %3, %8, %cst {dimension_numbers = #tpu.dot_dimension_numbers<[2], [1], [1], [2], [0, 0, 0, 1, 1, 2], [0], [0]>} : vector<16x4x9xf32>, vector<16x9x16xf32>, vector<16x4x16xf32> -> vector<16x4x16xf32>
    %cst_6 = arith.constant dense<0.000000e+00> : vector<16x4x32xf32>
    %10 = tpu.matmul %9, %7, %cst_6 {dimension_numbers = #tpu.dot_dimension_numbers<[2], [1], [1], [2], [0, 0, 0, 1, 1, 2], [0], [0]>} : vector<16x4x16xf32>, vector<16x16x32xf32>, vector<16x4x32xf32> -> vector<16x4x32xf32>
    %11 = vector.shape_cast %10 : vector<16x4x32xf32> to vector<16x128xf32>
    %c0_7 = arith.constant 0 : index
    %c0_8 = arith.constant 0 : index
    %12 = vector.load %arg4[%c0_7, %c0_8] : memref<32x16xf32, #tpu.memory_space<vmem>>, vector<32x16xf32>
    %cst_9 = arith.constant dense<0.000000e+00> : vector<32x128xf32>
    %13 = tpu.matmul %12, %11, %cst_9 {dimension_numbers = #tpu.dot_dimension_numbers<[1], [0], [0], [1], [0, 0, 1, 1], [], []>} : vector<32x16xf32>, vector<16x128xf32>, vector<32x128xf32> -> vector<32x128xf32>
    %c0_10 = arith.constant 0 : index
    %c0_11 = arith.constant 0 : index
    %14 = vector.load %arg5[%c0_10, %c0_11] : memref<32x128xf32, #tpu.memory_space<vmem>>, vector<32x128xf32>
    tpu.vector_store %arg5[%c0_10, %c0_11], %13 {strides = array<i32>} : memref<32x128xf32, #tpu.memory_space<vmem>>, vector<32x128xf32>,
    return
  }
  func.func @transform_0(%arg0: i32) -> (i32, i32, i32) {
    %c0_i32 = arith.constant 0 : i32
    %c0_i32_0 = arith.constant 0 : i32
    %c0_i32_1 = arith.constant 0 : i32
    %c0_i32_2 = arith.constant 0 : i32
    return %c0_i32, %c0_i32_0, %c0_i32_1 : i32, i32, i32
  }
  func.func @transform_1(%arg0: i32) -> (i32, i32) {
    %c0_i32 = arith.constant 0 : i32
    %c0_i32_0 = arith.constant 0 : i32
    %c0_i32_1 = arith.constant 0 : i32
    return %c0_i32, %c0_i32_0 : i32, i32
  }
  func.func @transform_2(%arg0: i32) -> (i32, i32) {
    %c0_i32 = arith.constant 0 : i32
    %c0_i32_0 = arith.constant 0 : i32
    %c0_i32_1 = arith.constant 0 : i32
    return %c0_i32, %c0_i32_0 : i32, i32
  }
  func.func @transform_3(%arg0: i32) -> (i32, i32) {
    %c0_i32 = arith.constant 0 : i32
    %c0_i32_0 = arith.constant 0 : i32
    %c0_i32_1 = arith.constant 0 : i32
    return %c0_i32, %c0_i32_0 : i32, i32
  }
  func.func @transform_4(%arg0: i32) -> (i32, i32) {
    %c0_i32 = arith.constant 0 : i32
    %c0_i32_0 = arith.constant 0 : i32
    %c0_i32_1 = arith.constant 0 : i32
    return %c0_i32, %c0_i32_0 : i32, i32
  }
}

</mosaic_0001>

<bundles_post_ra>
// kernel: unet_dsv2.1
= control target key start
LH: loop header
LB: loop body
LE: loop exit
PB: predicated region body
PF: predicated region fallthrough
CT: control target
= control target key end

     0   :  { %vm56_vm0 = vcmask 1040384   ;;  %v3200_v0 = vmov 0.0|0.0   ;;  %vm3201_vm1 = vmmov 1   ;;  %vm3202_vm3 = vmmov 0   ;;  %s3206_s5 = smov 96   ;;  %s3207_s6 = smov 32   ;;  %s3567_s0 = inlined_call_operand.vmem [shape: f32[16,9,16], index: 0, kind: input, shape index: {}]   ;;  %s3568_s1 = inlined_call_operand.vmem [shape: f32[4,9], index: 1, kind: input, shape index: {}]   ;;  %s3569_s2 = inlined_call_operand.vmem [shape: f32[16,32], index: 2, kind: input, shape index: {}]   ;;  %s3570_s3 = inlined_call_operand.vmem [shape: f32[32,16], index: 3, kind: input, shape index: {}]   ;;  %s3571_s4 = inlined_call_operand.vmem [shape: f32[32,128], index: 4, kind: output, shape index: {}]  }
   0x1   :  { %3060 = vmatprep.subr.bf16.mxu1 %v3200_v0  ;;  %v20_v1 = vld [vmem:[%s3567_s0] sm:$0xff]  ;;  %v21_v2 = vld [vmem:[%s3567_s0 + $0x8] sm:$0x1]  ;;  %vm3241_vm2 = vmpackc.low %vm56_vm0, %vm3201_vm1  ;;  %3068 = vmatprep.subr.bf16.mxu0 %v3200_v0  ;;  %v3203_v5 = vmov 0.0   ;;  %vm52_vm4 = vcmask 72704   ;;  %vm1225_vm5 = vcmask 130048  }
   0x2   :  { %v3061_v4 = vpack.c.bf16 %v21_v2, %v20_v1  ;;  %2830 = vmatprep.mubr.msk.f32.mxu1 %vm3202_vm3, %v3203_v5  ;;  %v22_v6 = vld [vmem:[%s3567_s0 + $0x10] sm:$0xff]  ;;  %v23_v7 = vld [vmem:[%s3567_s0 + $0x18] sm:$0x1]  ;;  %2844 = vmatprep.mubr.msk.f32.mxu0 %vm3202_vm3, %v3203_v5  ;;  %v24_v8 = vld [vmem:[%s3567_s0 + $0x20] sm:$0xff]  ;;  %s3208_s7 = smov 64   ;;  %vm2554_vm6 = vcmask 261120  }
   0x3   :  { %v25_v9 = vld [vmem:[%s3567_s0 + $0x28] sm:$0x1]  ;;  %v3267_v10 = vld [vmem:[%s3568_s1] sm:$0xf]  ;;  %v3065_v11 = vpack.c.bf16 %v23_v7, %v22_v6  ;;  %v26_v15 = vld [vmem:[%s3567_s0 + $0x30] sm:$0xff]  ;;  %vm2557_vm7 = vcmask 523264  }
   0x4   :  { %3063 = vmatpush3.bf16.msk.msra.mxu1 %vm3241_vm2, %v3061_v4  ;;  %v3069_v12 = vpack.c.bf16 %v25_v9, %v24_v8  ;;  %v28_v13 = vld [vmem:[%s3567_s0 + $0x40] sm:$0xff]  ;;  %v29_v14 = vld [vmem:[%s3567_s0 + $0x48] sm:$0x1]  ;;  %v27_v16 = vld [vmem:[%s3567_s0 + $0x38] sm:$0x1]  ;;  %vm2560_vm8 = vcmask 785408  }
   0x5   :  { %3064 = vmatprep.subr.bf16.mxu1 %v3200_v0  ;;  %v3077_v17 = vpack.c.bf16 %v29_v14, %v28_v13  ;;  %v32_v18 = vld [vmem:[%s3567_s0 + $0x60] sm:$0xff]  ;;  %v33_v19 = vld [vmem:[%s3567_s0 + $0x68] sm:$0x1]  ;;  %v3073_v20 = vpack.c.bf16 %v27_v16, %v26_v15  ;;  %v30_v21 = vld [vmem:[%s3567_s0 + $0x50] sm:$0xff] }
   0x6   :  { %3071 = vmatpush3.bf16.msk.msra.mxu0 %vm3241_vm2, %v3069_v12  ;;  %v31_v22 = vld [vmem:[%s3567_s0 + $0x58] sm:$0x1]  ;;  %v3085_v23 = vpack.c.bf16 %v33_v19, %v32_v18  ;;  %v36_v24 = vld [vmem:[%s3567_s0 + $0x80] sm:$0xff]  ;;  %v37_v25 = vld [vmem:[%s3567_s0 + $0x88] sm:$0x1] }
   0x7   :  { %2831 = vmatmul.mubr.msk.f32.vlgmr.msra.gmra.mrb[0].mxu1 %vm52_vm4, %v3267_v10  ;;  %3076 = vmatprep.subr.bf16.mxu0 %v3200_v0  ;;  %v3081_v26 = vpack.c.bf16 %v31_v22, %v30_v21  ;;  %v34_v27 = vld [vmem:[%s3567_s0 + $0x70] sm:$0xff]  ;;  %v35_v28 = vld [vmem:[%s3567_s0 + $0x78] sm:$0x1]  ;;  %v3093_v29 = vpack.c.bf16 %v37_v25, %v36_v24  ;;  %v40_v30 = vld [vmem:[%s3567_s0 + $0xa0] sm:$0xff]  ;;  %v3204_v25 = vmov 1983009808  }
   0x8   :  { %3067 = vmatpush3.bf16.msk.msra.mxu1 %vm3241_vm2, %v3065_v11  ;;  %2837 = vmatprep.mubr.msk.f32.mxu1 %vm3202_vm3, %v3203_v5  ;;  %v41_v31 = vld [vmem:[%s3567_s0 + $0xa8] sm:$0x1]  ;;  %v3089_v32 = vpack.c.bf16 %v35_v28, %v34_v27  ;;  %v38_v33 = vld [vmem:[%s3567_s0 + $0x90] sm:$0xff]  ;;  %v39_v34 = vld [vmem:[%s3567_s0 + $0x98] sm:$0x1]  ;;  %v2398_v27 = vlaneseq }
   0x9   :  { %2845 = vmatmul.mubr.msk.f32.vlgmr.msra.gmra.mrb[0].mxu0 %vm52_vm4, %v3267_v10  ;;  %3072 = vmatprep.subr.bf16.mxu1 %v3200_v0  ;;  %v3101_v35 = vpack.c.bf16 %v41_v31, %v40_v30  ;;  %v44_v36 = vld [vmem:[%s3567_s0 + $0xc0] sm:$0xff]  ;;  %v45_v37 = vld [vmem:[%s3567_s0 + $0xc8] sm:$0x1]  ;;  %v3097_v38 = vpack.c.bf16 %v39_v34, %v38_v33  ;;  %v42_v39 = vld [vmem:[%s3567_s0 + $0xb0] sm:$0xff] }
   0xa   :  { %3079 = vmatpush3.bf16.msk.msra.mxu0 %vm3241_vm2, %v3077_v17  ;;  %2858 = vmatprep.mubr.msk.f32.mxu0 %vm3202_vm3, %v3203_v5  ;;  %v43_v40 = vld [vmem:[%s3567_s0 + $0xb8] sm:$0x1]  ;;  %v3109_v41 = vpack.c.bf16 %v45_v37, %v44_v36  ;;  %v48_v42 = vld [vmem:[%s3567_s0 + $0xe0] sm:$0xff]  ;;  %v49_v43 = vld [vmem:[%s3567_s0 + $0xe8] sm:$0x1]  ;;  %v2399_v30 = vshrl.u32 %v2398_v27, 7 }
   0xb   :  { %2838 = vmatmul.mubr.msk.f32.vlgmr.msra.gmra.mrb[2].mxu1 %vm52_vm4, %v3267_v10  ;;  %3084 = vmatprep.subr.bf16.mxu0 %v3200_v0  ;;  %v3105_v44 = vpack.c.bf16 %v43_v40, %v42_v39  ;;  %v46_v45 = vld [vmem:[%s3567_s0 + $0xd0] sm:$0xff]  ;;  %v47_v46 = vld [vmem:[%s3567_s0 + $0xd8] sm:$0x1]  ;;  %v3117_v47 = vpack.c.bf16 %v49_v43, %v48_v42  ;;  %v18_v48 = vld [vmem:[%s3569_s2] sm:$0xff]  ;;  %v3205_v43 = vmov 1934713408  }
   0xc   :  { %3075 = vmatpush3.bf16.msk.msra.mxu1 %vm3241_vm2, %v3073_v20  ;;  %2851 = vmatprep.mubr.msk.f32.mxu1 %vm3202_vm3, %v3203_v5  ;;  %v19_v49 = vld [vmem:[%s3569_s2 + $0x8] sm:$0xff]  ;;  %v3113_v50 = vpack.c.bf16 %v47_v46, %v46_v45  ;;  %v50_v51 = vld [vmem:[%s3567_s0 + $0xf0] sm:$0xff]  ;;  %v51_v52 = vld [vmem:[%s3567_s0 + $0xf8] sm:$0x1] }
   0xd   :  { %2859 = vmatmul.mubr.msk.f32.vlgmr.msra.gmra.mrb[2].mxu0 %vm52_vm4, %v3267_v10  ;;  %3080 = vmatprep.subr.bf16.mxu1 %v3200_v0  ;;  %v3440_v53 = vpack.c.bf16 %v19_v49, %v18_v48  ;;  %v3121_v54 = vpack.c.bf16 %v51_v52, %v50_v51 }
   0xe   :  { %3087 = vmatpush3.bf16.msk.msra.mxu0 %vm3241_vm2, %v3085_v23  ;;  %2872 = vmatprep.mubr.msk.f32.mxu0 %vm3202_vm3, %v3203_v5 }
   0xf   :  { %2852 = vmatmul.mubr.msk.f32.vlgmr.msra.gmra.mrb[4].mxu1 %vm52_vm4, %v3267_v10  ;;  %3092 = vmatprep.subr.bf16.mxu0 %v3200_v0 }
  0x10   :  { %3083 = vmatpush3.bf16.msk.msra.mxu1 %vm3241_vm2, %v3081_v26  ;;  %2865 = vmatprep.mubr.msk.f32.mxu1 %vm3202_vm3, %v3203_v5  ;;  %v2396_v26 = vunpack.c.l.s4 %v3204_v25 }
  0x11   :  { %2873 = vmatmul.mubr.msk.f32.vlgmr.msra.gmra.mrb[4].mxu0 %vm52_vm4, %v3267_v10  ;;  %3088 = vmatprep.subr.bf16.mxu1 %v3200_v0 }
  0x12   :  { %3095 = vmatpush3.bf16.msk.msra.mxu0 %vm3241_vm2, %v3093_v29  ;;  %2886 = vmatprep.mubr.msk.f32.mxu0 %vm3202_vm3, %v3203_v5 }
  0x13   :  { %2866 = vmatmul.mubr.msk.f32.vlgmr.msra.gmra.mrb[6].mxu1 %vm52_vm4, %v3267_v10  ;;  %3100 = vmatprep.subr.bf16.mxu0 %v3200_v0 }
  0x14   :  { %3091 = vmatpush3.bf16.msk.msra.mxu1 %vm3241_vm2, %v3089_v32  ;;  %2879 = vmatprep.mubr.msk.f32.mxu1 %vm3202_vm3, %v3203_v5 }
  0x15   :  { %2887 = vmatmul.mubr.msk.f32.vlgmr.msra.gmra.mrb[6].mxu0 %vm52_vm4, %v3267_v10  ;;  %3096 = vmatprep.subr.bf16.mxu1 %v3200_v0 }
  0x16   :  { %3103 = vmatpush3.bf16.msk.msra.mxu0 %vm3241_vm2, %v3101_v35  ;;  %2900 = vmatprep.mubr.msk.f32.mxu0 %vm3202_vm3, %v3203_v5 }
  0x17   :  { %2880 = vmatmul.mubr.msk.f32.vlgmr.msra.gmra.mrb[8].mxu1 %vm52_vm4, %v3267_v10  ;;  %3108 = vmatprep.subr.bf16.mxu0 %v3200_v0 }
  0x18   :  { %3099 = vmatpush3.bf16.msk.msra.mxu1 %vm3241_vm2, %v3097_v38  ;;  %2893 = vmatprep.mubr.msk.f32.mxu1 %vm3202_vm3, %v3203_v5 }
  0x19   :  { %2901 = vmatmul.mubr.msk.f32.vlgmr.msra.gmra.mrb[8].mxu0 %vm52_vm4, %v3267_v10  ;;  %3104 = vmatprep.subr.bf16.mxu1 %v3200_v0 }
  0x1a   :  { %3111 = vmatpush3.bf16.msk.msra.mxu0 %vm3241_vm2, %v3109_v41  ;;  %2914 = vmatprep.mubr.msk.f32.mxu0 %vm3202_vm3, %v3203_v5 }
  0x1b   :  { %2894 = vmatmul.mubr.msk.f32.vlgmr.msra.gmra.mrb[10].mxu1 %vm52_vm4, %v3267_v10  ;;  %3116 = vmatprep.subr.bf16.mxu0 %v3200_v0 }
  0x1c   :  { %3107 = vmatpush3.bf16.msk.msra.mxu1 %vm3241_vm2, %v3105_v44  ;;  %2907 = vmatprep.mubr.msk.f32.mxu1 %vm3202_vm3, %v3203_v5  ;;  %v2429_v44 = vunpack.c.l.s4 %v3205_v43 }
  0x1d   :  { %2915 = vmatmul.mubr.msk.f32.vlgmr.msra.gmra.mrb[10].mxu0 %vm52_vm4, %v3267_v10  ;;  %3112 = vmatprep.subr.bf16.mxu1 %v3200_v0 }
  0x1e   :  { %3119 = vmatpush3.bf16.msk.msra.mxu0 %vm3241_vm2, %v3117_v47  ;;  %2928 = vmatprep.mubr.msk.f32.mxu0 %vm3202_vm3, %v3203_v5  ;;  %v2430_v52 = vunpack.c.0.s8 %v2429_v44 }
  0x1f   :  { %2908 = vmatmul.mubr.msk.f32.vlgmr.msra.gmra.mrb[12].mxu1 %vm52_vm4, %v3267_v10  ;;  %3124 = vmatprep.subr.bf16.mxu0 %v3200_v0 }
  0x20   :  { %3115 = vmatpush3.bf16.msk.msra.mxu1 %vm3241_vm2, %v3113_v50  ;;  %2921 = vmatprep.mubr.msk.f32.mxu1 %vm3202_vm3, %v3203_v5 }
  0x21   :  { %2929 = vmatmul.mubr.msk.f32.vlgmr.msra.gmra.mrb[12].mxu0 %vm52_vm4, %v3267_v10  ;;  %3120 = vmatprep.subr.bf16.mxu1 %v3200_v0 }
  0x22   :  { %3126 = vmatpush3.bf16.msra.mxu0 %v3440_v53  ;;  %2942 = vmatprep.mubr.msk.f32.mxu0 %vm3202_vm3, %v3203_v5 }
  0x23   :  { %2922 = vmatmul.mubr.msk.f32.vlgmr.msra.gmra.mrb[14].mxu1 %vm52_vm4, %v3267_v10  ;;  %3130 = vmatprep.subr.bf16.mxu0 %v3200_v0 }
  0x24   :  { %3123 = vmatpush3.bf16.msk.msra.mxu1 %vm3241_vm2, %v3121_v54  ;;  %2935 = vmatprep.mubr.msk.f32.mxu1 %vm3202_vm3, %v3203_v5 }
  0x25   :  { %3127 = vmatprep.subr.bf16.mxu1 %v3200_v0 }
  0x27   :  { %2936 = vmatmul.mubr.msk.f32.vlgmr.msra.gmra.mrb[16].mxu1 %vm52_vm4, %v3267_v10 }
  0x28   :  { %3129 = vmatpush3.bf16.msra.mxu1 %v3440_v53  ;;  %2949 = vmatprep.mubr.msk.f32.mxu1 %vm3202_vm3, %v3203_v5 }
  0x29   :  { %3133 = vmatprep.subr.bf16.mxu1 %v3200_v0 }
  0xda   :  { %v126_v55 = vpop.f32.mrb[0].mxu1 }
  0xdb   :  { %v2832_v56 = vpop.f32.mrb[1].mxu1  ;;  %2943 = vmatmul.mubr.msk.f32.vlgmr.msra.gmra.mrb[14].mxu0 %vm1225_vm5, %v126_v55 }
  0xdc   :  { %3132 = vmatpush3.bf16.msra.mxu0 %v3440_v53  ;;  %v272_v57 = vpop.f32.mrb[0].mxu0  ;;  %2956 = vmatprep.mubr.msk.f32.mxu0 %vm3202_vm3, %v3203_v5 }
  0xdd   :  { %3136 = vmatprep.subr.bf16.mxu0 %v3200_v0  ;;  %v2846_v58 = vpop.f32.mrb[1].mxu0 }
  0xde   :  { %v199_v59 = vpop.f32.mrb[2].mxu1 }
  0xdf   :  { %v2839_v60 = vpop.f32.mrb[3].mxu1  ;;  %2950 = vmatmul.mubr.msk.f32.vlgmr.msra.gmra.mrb[18].mxu1 %vm1225_vm5, %v199_v59  ;;  %2957 = vmatmul.mubr.msk.f32.vlgmr.msra.gmra.mrb[16].mxu0 %vm1225_vm5, %v272_v57 }
  0xe0   :  { %3135 = vmatpush3.bf16.msra.mxu1 %v3440_v53  ;;  %3138 = vmatpush3.bf16.msra.mxu0 %v3440_v53  ;;  %v418_v61 = vpop.f32.mrb[2].mxu0  ;;  %v2433_v60 = vsub.s32 %v2430_v52, %v2399_v30 }
  0xe1   :  { %2963 = vmatprep.mubr.msk.f32.mxu1 %vm3202_vm3, %v3203_v5  ;;  %2970 = vmatprep.mubr.msk.f32.mxu0 %vm3202_vm3, %v3203_v5  ;;  %v2860_v62 = vpop.f32.mrb[3].mxu0 }
  0xe2   :  { %v345_v63 = vpop.f32.mrb[4].mxu1  ;;  %3139 = vmatprep.subr.bf16.mxu1 %v3200_v0  ;;  %3142 = vmatprep.subr.bf16.mxu0 %v3200_v0 }
  0xe3   :  { %v2853_v1 = vpop.f32.mrb[5].mxu1  ;;  %2964 = vmatmul.mubr.msk.f32.vlgmr.msra.gmra.mrb[20].mxu1 %vm1225_vm5, %v345_v63  ;;  %2971 = vmatmul.mubr.msk.f32.vlgmr.msra.gmra.mrb[18].mxu0 %vm1225_vm5, %v418_v61 }
  0xe4   :  { %3141 = vmatpush3.bf16.msra.mxu1 %v3440_v53  ;;  %3144 = vmatpush3.bf16.msra.mxu0 %v3440_v53  ;;  %v564_v2 = vpop.f32.mrb[4].mxu0 }
  0xe5   :  { %2977 = vmatprep.mubr.msk.f32.mxu1 %vm3202_vm3, %v3203_v5  ;;  %2984 = vmatprep.mubr.msk.f32.mxu0 %vm3202_vm3, %v3203_v5  ;;  %v2874_v3 = vpop.f32.mrb[5].mxu0 }
  0xe6   :  { %v491_v4 = vpop.f32.mrb[6].mxu1  ;;  %3145 = vmatprep.subr.bf16.mxu1 %v3200_v0  ;;  %3148 = vmatprep.subr.bf16.mxu0 %v3200_v0 }
  0xe7   :  { %v2867_v6 = vpop.f32.mrb[7].mxu1  ;;  %2978 = vmatmul.mubr.msk.f32.vlgmr.msra.gmra.mrb[22].mxu1 %vm1225_vm5, %v491_v4  ;;  %2985 = vmatmul.mubr.msk.f32.vlgmr.msra.gmra.mrb[20].mxu0 %vm1225_vm5, %v564_v2 }
  0xe8   :  { %3147 = vmatpush3.bf16.msra.mxu1 %v3440_v53  ;;  %3150 = vmatpush3.bf16.msra.mxu0 %v3440_v53  ;;  %v710_v7 = vpop.f32.mrb[6].mxu0 }
  0xe9   :  { %2991 = vmatprep.mubr.msk.f32.mxu1 %vm3202_vm3, %v3203_v5  ;;  %2998 = vmatprep.mubr.msk.f32.mxu0 %vm3202_vm3, %v3203_v5  ;;  %v2888_v8 = vpop.f32.mrb[7].mxu0 }
  0xea   :  { %v637_v9 = vpop.f32.mrb[8].mxu1  ;;  %3151 = vmatprep.subr.bf16.mxu1 %v3200_v0  ;;  %3154 = vmatprep.subr.bf16.mxu0 %v3200_v0 }
  0xeb   :  { %v2881_v10 = vpop.f32.mrb[9].mxu1  ;;  %2992 = vmatmul.mubr.msk.f32.vlgmr.msra.gmra.mrb[24].mxu1 %vm1225_vm5, %v637_v9  ;;  %2999 = vmatmul.mubr.msk.f32.vlgmr.msra.gmra.mrb[22].mxu0 %vm1225_vm5, %v710_v7 }
  0xec   :  { %3153 = vmatpush3.bf16.msra.mxu1 %v3440_v53  ;;  %3156 = vmatpush3.bf16.msra.mxu0 %v3440_v53  ;;  %v856_v11 = vpop.f32.mrb[8].mxu0 }
  0xed   :  { %3005 = vmatprep.mubr.msk.f32.mxu1 %vm3202_vm3, %v3203_v5  ;;  %3012 = vmatprep.mubr.msk.f32.mxu0 %vm3202_vm3, %v3203_v5  ;;  %v2902_v12 = vpop.f32.mrb[9].mxu0 }
  0xee   :  { %v783_v13 = vpop.f32.mrb[10].mxu1  ;;  %3157 = vmatprep.subr.bf16.mxu1 %v3200_v0  ;;  %3160 = vmatprep.subr.bf16.mxu0 %v3200_v0 }
  0xef   :  { %v2895_v14 = vpop.f32.mrb[11].mxu1  ;;  %3006 = vmatmul.mubr.msk.f32.vlgmr.msra.gmra.mrb[26].mxu1 %vm1225_vm5, %v783_v13  ;;  %3013 = vmatmul.mubr.msk.f32.vlgmr.msra.gmra.mrb[24].mxu0 %vm1225_vm5, %v856_v11 }
  0xf0   :  { %3159 = vmatpush3.bf16.msra.mxu1 %v3440_v53  ;;  %3162 = vmatpush3.bf16.msra.mxu0 %v3440_v53  ;;  %v1002_v15 = vpop.f32.mrb[10].mxu0 }
  0xf1   :  { %3019 = vmatprep.mubr.msk.f32.mxu1 %vm3202_vm3, %v3203_v5  ;;  %3026 = vmatprep.mubr.msk.f32.mxu0 %vm3202_vm3, %v3203_v5  ;;  %v2916_v16 = vpop.f32.mrb[11].mxu0 }
  0xf2   :  { %v929_v17 = vpop.f32.mrb[12].mxu1  ;;  %3163 = vmatprep.subr.bf16.mxu1 %v3200_v0  ;;  %3166 = vmatprep.subr.bf16.mxu0 %v3200_v0 }
  0xf3   :  { %v2909_v18 = vpop.f32.mrb[13].mxu1  ;;  %3020 = vmatmul.mubr.msk.f32.vlgmr.msra.gmra.mrb[28].mxu1 %vm1225_vm5, %v929_v17  ;;  %3027 = vmatmul.mubr.msk.f32.vlgmr.msra.gmra.mrb[26].mxu0 %vm1225_vm5, %v1002_v15 }
  0xf4   :  { %3165 = vmatpush3.bf16.msra.mxu1 %v3440_v53  ;;  %3168 = vmatpush3.bf16.msra.mxu0 %v3440_v53  ;;  %v1148_v19 = vpop.f32.mrb[12].mxu0 }
  0xf5   :  { %3033 = vmatprep.mubr.msk.f32.mxu1 %vm3202_vm3, %v3203_v5  ;;  %3040 = vmatprep.mubr.msk.f32.mxu0 %vm3202_vm3, %v3203_v5  ;;  %v2930_v20 = vpop.f32.mrb[13].mxu0 }
  0xf6   :  { %v1075_v21 = vpop.f32.mrb[14].mxu1  ;;  %3169 = vmatprep.subr.bf16.mxu1 %v3200_v0  ;;  %v2397_v0 = vunpack.c.0.s8 %v2396_v26 }
  0xf7   :  { %v2923_v22 = vpop.f32.mrb[15].mxu1  ;;  %3034 = vmatmul.mubr.msk.f32.vlgmr.msra.gmra.mrb[30].mxu1 %vm1225_vm5, %v1075_v21  ;;  %3041 = vmatmul.mubr.msk.f32.vlgmr.msra.gmra.mrb[28].mxu0 %vm1225_vm5, %v1148_v19 }
  0xf8   :  { %3171 = vmatpush3.bf16.msra.mxu1 %v3440_v53  ;;  %3047 = vmatprep.mubr.msk.f32.mxu1 %vm3202_vm3, %v3203_v5  ;;  %v2400_v36 = vsub.s32 %v2397_v0, %v2399_v30 }
  0xfa   :  { %v1221_v23 = vpop.f32.mrb[16].mxu1 }
  0xfb   :  { %v2937_v24 = vpop.f32.mrb[17].mxu1  ;;  %3048 = vmatmul.mubr.msk.f32.vlgmr.msra.gmra.mrb[32].mxu1 %vm1225_vm5, %v1221_v23 }
 0x1ae   :  { %v1295_v28 = vpop.f32.mrb[14].mxu0 }
 0x1af   :  { %v2944_v29 = vpop.f32.mrb[15].mxu0 }
 0x1b2   :  { %v1368_v31 = vpop.f32.mrb[18].mxu1  ;;  %v1441_v32 = vpop.f32.mrb[16].mxu0 }
 0x1b3   :  { %v2394_v33 = vcombine.low %v1295_v28, %v1441_v32  ;;  %v2951_v34 = vpop.f32.mrb[19].mxu1  ;;  %v2958_v35 = vpop.f32.mrb[17].mxu0 }
 0x1b5   :  { %v2401_v41 = vrot.slane %v2394_v33, %v2400_v36 }
 0x1b6   :  { %v1514_v37 = vpop.f32.mrb[20].mxu1  ;;  %v1587_v38 = vpop.f32.mrb[18].mxu0 }
 0x1b7   :  { %v2402_v5 = vcombine.low %v1368_v31, %v1514_v37  ;;  %v2965_v39 = vpop.f32.mrb[21].mxu1  ;;  %v2972_v40 = vpop.f32.mrb[19].mxu0 }
 0x1b9   :  { %v2409_v42 = vrot.slane %v2402_v5, %v2400_v36 }
 0x1ba   :  { %v1660_v45 = vpop.f32.mrb[22].mxu1  ;;  %v1733_v46 = vpop.f32.mrb[20].mxu0 }
 0x1bb   :  { %v2426_v47 = vcombine.low %v2401_v41, %v2409_v42  ;;  %v2427_v48 = vcombine.high %v2401_v41, %v2409_v42  ;;  %v2410_v49 = vcombine.low %v1587_v38, %v1733_v46  ;;  %v2979_v50 = vpop.f32.mrb[23].mxu1  ;;  %v2986_v51 = vpop.f32.mrb[21].mxu0 }
 0x1bd   :  { %v2417_v58 = vrot.slane %v2410_v49, %v2400_v36  ;;  %v2441_v6 = vrot.slane %v2427_v48, %v2433_v60  ;;  %v2434_v8 = vrot.slane %v2426_v47, %v2433_v60 }
 0x1be   :  { %v1806_v53 = vpop.f32.mrb[24].mxu1  ;;  %v1879_v54 = vpop.f32.mrb[22].mxu0 }
 0x1bf   :  { %v2418_v55 = vcombine.low %v1660_v45, %v1806_v53  ;;  %v2993_v56 = vpop.f32.mrb[25].mxu1  ;;  %v3000_v57 = vpop.f32.mrb[23].mxu0  ;;  %v2563_v45 = vld [vmem:[%s3570_s3] sm:$0xff] }
 0x1c0   :  { %3054 = vmatprep.mubr.msk.f32.mxu0 %vm1225_vm5, %v2563_v45 }
 0x1c1   :  { %v2425_v59 = vrot.slane %v2418_v55, %v2400_v36 }
 0x1c2   :  { %v1952_v61 = vpop.f32.mrb[26].mxu1  ;;  %v2025_v62 = vpop.f32.mrb[24].mxu0 }
 0x1c3   :  { %v2442_v63 = vcombine.low %v2417_v58, %v2425_v59  ;;  %v2443_v1 = vcombine.high %v2417_v58, %v2425_v59  ;;  %v2462_v2 = vcombine.low %v1879_v54, %v2025_v62  ;;  %v3007_v3 = vpop.f32.mrb[27].mxu1  ;;  %v3014_v4 = vpop.f32.mrb[25].mxu0  ;;  %v2565_v62 = vld [vmem:[%s3570_s3 + $0x10] sm:$0xff] }
 0x1c5   :  { %v2457_v7 = vrot.slane %v2443_v1, %v2433_v60  ;;  %v2450_v9 = vrot.slane %v2442_v63, %v2433_v60  ;;  %v2469_v19 = vrot.slane %v2462_v2, %v2400_v36  ;;  %v2566_v63 = vld [vmem:[%s3570_s3 + $0x18] sm:$0xff] }
 0x1c6   :  { %v2098_v10 = vpop.f32.mrb[28].mxu1  ;;  %v2171_v11 = vpop.f32.mrb[26].mxu0 }
 0x1c7   :  { %v2470_v12 = vcombine.low %v1952_v61, %v2098_v10  ;;  %v3021_v13 = vpop.f32.mrb[29].mxu1  ;;  %v3028_v14 = vpop.f32.mrb[27].mxu0  ;;  %v2461_v15 = vcombine.high %v2441_v6, %v2457_v7  ;;  %v2458_v16 = vcombine.low %v2434_v8, %v2450_v9  ;;  %v2459_v17 = vcombine.high %v2434_v8, %v2450_v9  ;;  %v2564_v61 = vld [vmem:[%s3570_s3 + $0x8] sm:$0xff] }
 0x1c8   :  { %v2460_v18 = vcombine.low %v2441_v6, %v2457_v7 }
 0x1c9   :  { %v2477_v20 = vrot.slane %v2470_v12, %v2400_v36 }
 0x1ca   :  { %v2244_v21 = vpop.f32.mrb[30].mxu1  ;;  %v2317_v22 = vpop.f32.mrb[28].mxu0 }
 0x1cb   :  { %v2494_v23 = vcombine.low %v2469_v19, %v2477_v20  ;;  %v2495_v24 = vcombine.high %v2469_v19, %v2477_v20  ;;  %v2478_v25 = vcombine.low %v2171_v11, %v2317_v22  ;;  %v3035_v26 = vpop.f32.mrb[31].mxu1  ;;  %v3042_v27 = vpop.f32.mrb[29].mxu0 }
 0x1cd   :  { %v2485_v30 = vrot.slane %v2478_v25, %v2400_v36  ;;  %v2509_v34 = vrot.slane %v2495_v24, %v2433_v60  ;;  %v2502_v37 = vrot.slane %v2494_v23, %v2433_v60 }
 0x1ce   :  { %v2390_v28 = vpop.f32.mrb[32].mxu1 }
 0x1cf   :  { %v2486_v29 = vcombine.low %v2244_v21, %v2390_v28  ;;  %v3049_v0 = vpop.f32.mrb[33].mxu1 }
 0x1d1   :  { %v2493_v31 = vrot.slane %v2486_v29, %v2400_v36 }
 0x1d3   :  { %v2510_v32 = vcombine.low %v2485_v30, %v2493_v31  ;;  %v2511_v33 = vcombine.high %v2485_v30, %v2493_v31 }
 0x1d5   :  { %v2525_v35 = vrot.slane %v2511_v33, %v2433_v60  ;;  %v2518_v38 = vrot.slane %v2510_v32, %v2433_v60 }
 0x1d7   :  { %v2529_v5 = vcombine.high %v2509_v34, %v2525_v35  ;;  %v2527_v39 = vcombine.high %v2502_v37, %v2518_v38  ;;  %v2526_v40 = vcombine.low %v2502_v37, %v2518_v38  ;;  %v2528_v41 = vcombine.low %v2509_v34, %v2525_v35 }
 0x1d9   :  { %v3195_v42 = vpack.i.bf16 %v2529_v5, %v2461_v15  ;;  %v3185_v43 = vpack.i.bf16 %v2527_v39, %v2459_v17  ;;  %v3190_v44 = vpack.i.bf16 %v2528_v41, %v2460_v18 }
 0x1db   :  { %3196 = vrot.lane.b32.xlu1 %v3195_v42, %s3206_s5  ;;  %3186 = vrot.lane.b32.xlu0 %v3185_v43, %s3207_s6 }
 0x1df   :  { %3191 = vrot.lane.b32.xlu0 %v3190_v44, %s3208_s7 }
 0x24d   :  { %v3187_v36 = vpop.permute.xlu0 %3186  ;;  %v3197_v48 = vpop.permute.xlu1 %3196 }
 0x24e   :  { %v3189_v46 = vunpack.i.h.bf16 %v3187_v36  ;;  %v3188_v47 = vunpack.i.l.bf16 %v3187_v36  ;;  %v3199_v52 = vunpack.i.h.bf16 %v3197_v48  ;;  %v3198_v53 = vunpack.i.l.bf16 %v3197_v48 }
 0x250   :  { %v2555_v54 = vsel %vm2554_vm6, %v2458_v16, %v3188_v47  ;;  %v2556_v55 = vsel %vm2554_vm6, %v2526_v40, %v3189_v46 }
 0x251   :  { %v3192_v49 = vpop.permute.xlu0 %3191 }
 0x252   :  { %v3194_v50 = vunpack.i.h.bf16 %v3192_v49  ;;  %v3193_v51 = vunpack.i.l.bf16 %v3192_v49 }
 0x254   :  { %v2558_v56 = vsel %vm2557_vm7, %v2555_v54, %v3193_v51  ;;  %v2559_v57 = vsel %vm2557_vm7, %v2556_v55, %v3194_v50 }
 0x255   :  { %v2561_v58 = vsel %vm2560_vm8, %v2558_v56, %v3198_v53  ;;  %v2562_v59 = vsel %vm2560_vm8, %v2559_v57, %v3199_v52 }
 0x256   :  { %v3172_v60 = vpack.c.bf16 %v2562_v59, %v2561_v58 }
 0x258   :  { %3173 = vmatprep.subr.bf16.mxu0 %v3172_v60 }
 0x259   :  { %3175 = vmatpush3.bf16.msra.mxu0 %v3172_v60 }
 0x25c   :  { %3055 = vmatmul.mubr.msk.f32.vlgmr.msra.gmra.mrb[30].mxu0 %vm1225_vm5, %v2564_v61 }
 0x25d   :  { %3057 = vmatprep.mubr.msk.f32.mxu0 %vm1225_vm5, %v2565_v62 }
 0x260   :  { %3058 = vmatmul.mubr.msk.f32.gmra.mrb[32].mxu0 %vm1225_vm5, %v2566_v63 }
 0x32f   :  { %v3056_v1 = vpop.f32.mrb[30].mxu0 }
 0x330   :  { %2665 = vst [vmem:[%s3571_s4 + $0x8] sm:$0xff] %v3056_v1  ;;  %v2645_v2 = vpop.f32.mrb[31].mxu0 }
 0x331   :  { %2664 = vst [vmem:[%s3571_s4] sm:$0xff] %v2645_v2 }
 0x333   :  { %v3059_v3 = vpop.f32.mrb[32].mxu0 }
 0x334   :  { %2667 = vst [vmem:[%s3571_s4 + $0x18] sm:$0xff] %v3059_v3  ;;  %v2655_v4 = vpop.f32.mrb[33].mxu0 }
 0x335   :  { %2666 = vst [vmem:[%s3571_s4 + $0x10] sm:$0xff] %v2655_v4 }

</bundles_post_ra>
